<compile_context>
chip_gen: v6e
topology: v6e:2x2x1
jax: 0.10.0
libtpu: 0.0.40
codegen_flags: <defaults>
</compile_context>

<pallas_src>
import jax
import jax.numpy as jnp
from jax.experimental import pallas as pl
from jax.experimental.pallas import tpu as pltpu


def _round_up(v, m):
    return ((v + m - 1) // m) * m


def memory_kernel(x_ref, w_ref, b_ref, o_ref):
    """One fused matmul + split epilogue.

    x_ref: (TILE_B, K)   w_ref: (K, 2*Mp)   b_ref: (1, 2*Mp)   o_ref: (TILE_B, Mp)
    """
    x = x_ref[...]
    b = b_ref[...]                                  # f32 bias, broadcast over rows

    # Single MXU matmul (f32 accumulation) covering both linear layers.
    fused = jnp.dot(x, w_ref[...], preferred_element_type=jnp.float32) + b

    # Mp is guaranteed (asserted in the wrapper) to be a multiple of 128, so
    # both slices below are lane-aligned -> zero-cost views, no VMEM relayout.
    m = o_ref.shape[-1]
    mem = jnp.tanh(fused[:, :m])                    # write_net: Linear -> Tanh
    # sigmoid(z) == 0.5*(1 + tanh(z/2)): one EUP transcendental instead of two.
    gate = 0.5 * (1.0 + jnp.tanh(0.5 * fused[:, m:]))

    o_ref[...] = (mem * gate).astype(o_ref.dtype)


def prepare_memory_params(w_write, b_write, w_read, b_read,
                          *, compute_dtype=jnp.float32):
    """One-time parameter prep (hoisted out of the per-call forward).

    w_*: (K, M) == PyTorch nn.Linear weight transposed; b_*: (M,).
    Pads M to a multiple of 128 (lane-dense output + aligned split point),
    fuses the two layers into one (K, 2*Mp) operand, and casts the weight to
    the matmul compute dtype (bias stays f32; it is added to the f32 MXU
    accumulator).  Padded columns give tanh(0)*sigmoid(0) = 0 and are sliced
    away only when M != Mp.
    """
    K, M = w_write.shape
    Mp = _round_up(M, 128)
    if Mp != M:
        pad_w = ((0, 0), (0, Mp - M))
        w_write = jnp.pad(w_write, pad_w)
        w_read = jnp.pad(w_read, pad_w)
        b_write = jnp.pad(b_write, (0, Mp - M))
        b_read = jnp.pad(b_read, (0, Mp - M))
    w_fused = jnp.concatenate([w_write, w_read], axis=1).astype(compute_dtype)
    b_fused = jnp.concatenate([b_write, b_read]).astype(jnp.float32).reshape(1, 2 * Mp)
    return {"w_fused": w_fused, "b_fused": b_fused,
            "K": K, "M": M, "Mp": Mp, "compute_dtype": compute_dtype}


def memory_module_forward(x, params, *, out_dtype=None, vmem_budget_bytes=32 << 20):
    """x: (B, K) -> (B, M).  `params` comes from prepare_memory_params."""
    B, K = x.shape
    assert K == params["K"], "input_size mismatch"
    M, Mp = params["M"], params["Mp"]
    assert Mp % 128 == 0, "fused split point must stay 128-lane aligned"
    w_fused, b_fused = params["w_fused"], params["b_fused"]
    compute_dtype = params["compute_dtype"]

    if out_dtype is None:
        out_dtype = x.dtype
    # bf16 x halves the dominant HBM input stream on this memory-bound op.
    # TODO(synk): ideally the producer emits bf16 directly (this cast is an
    # extra XLA op when x arrives as f32).
    x = x.astype(compute_dtype)

    x_item = jnp.dtype(compute_dtype).itemsize
    w_item = jnp.dtype(compute_dtype).itemsize
    o_item = jnp.dtype(out_dtype).itemsize

    # --- VMEM budget -> batch tile -------------------------------------------
    # Fixed residents: fused weight (counted conservatively at 2 buffers even
    # though we request Buffered(1)) + bias.
    fixed_bytes = 2 * K * (2 * Mp) * w_item + 2 * (2 * Mp) * 4
    # Per batch row: x tile (x2 buffers) + out tile (x2 buffers)
    #                + f32 fused intermediate (single) + epilogue-temp margin.
    per_row = 2 * K * x_item + 2 * Mp * o_item + (2 * Mp) * 4 + (2 * Mp) * 4
    avail = max(vmem_budget_bytes - fixed_bytes, 8 * per_row)
    tile_b = max(8, (avail // per_row) // 8 * 8)        # no artificial cap
    tile_b = min(tile_b, _round_up(B, 8))               # don't over-allocate
    if B >= 16:
        # >= 2 grid steps so both v7x TensorCores get work ("parallel" axis);
        # the extra ~0.35us step is noise on v5e/v6e.
        tile_b = min(tile_b, _round_up(pl.cdiv(B, 2), 8))

    # Ragged last block: OOB rows of x are read as garbage, flow through the
    # epilogue, and are masked on store (never reach HBM).
    grid = (pl.cdiv(B, tile_b),)

    cost = pl.CostEstimate(
        flops=int(2 * B * K * (2 * Mp)),
        transcendentals=int(2 * B * Mp),                 # tanh + tanh-sigmoid
        bytes_accessed=int(B * K * x_item + K * 2 * Mp * w_item
                           + 2 * Mp * 4 + B * Mp * o_item),
    )

    def _run(single_buffer_weights):
        pinned = {"pipeline_mode": pl.Buffered(1)} if single_buffer_weights else {}
        return pl.pallas_call(
            memory_kernel,
            out_shape=jax.ShapeDtypeStruct((B, Mp), out_dtype),
            grid=grid,
            in_specs=[
                pl.BlockSpec((tile_b, K), lambda i: (i, 0)),           # x: streamed
                pl.BlockSpec((K, 2 * Mp), lambda i: (0, 0), **pinned),  # W: pinned
                pl.BlockSpec((1, 2 * Mp), lambda i: (0, 0), **pinned),  # b: pinned
            ],
            out_specs=pl.BlockSpec((tile_b, Mp), lambda i: (i, 0)),
            compiler_params=pltpu.CompilerParams(
                dimension_semantics=("parallel",),
                vmem_limit_bytes=int(vmem_budget_bytes),
            ),
            cost_estimate=cost,
        )(x, w_fused, b_fused)

    try:
        out = _run(True)
    except Exception:
        # This JAX build rejects single-buffered pinned operands; the default
        # double-buffered path is still correct (and the budget assumed it).
        out = _run(False)

    return out if Mp == M else out[:, :M]


def _torch_like_linear_init(key, in_features, out_features):
    """Matches nn.Linear default init: U(-1/sqrt(in), 1/sqrt(in))."""
    kw, kb = jax.random.split(key)
    bound = 1.0 / jnp.sqrt(jnp.float32(in_features))
    # stored as (in_features, out_features) == W^T for row-major x @ W
    w = jax.random.uniform(kw, (in_features, out_features),
                           minval=-bound, maxval=bound, dtype=jnp.float32)
    b = jax.random.uniform(kb, (out_features,),
                           minval=-bound, maxval=bound, dtype=jnp.float32)
    return w, b


if __name__ == "__main__":
    input_size = 32
    memory_size = 128

    key = jax.random.PRNGKey(0)
    k_x1, k_x2, k_w, k_r = jax.random.split(key, 4)

    w_write, b_write = _torch_like_linear_init(k_w, input_size, memory_size)
    w_read, b_read = _torch_like_linear_init(k_r, input_size, memory_size)

    def reference(x):
        return jnp.tanh(x @ w_write + b_write) * jax.nn.sigmoid(x @ w_read + b_read)

    # --- f32 compute path, tile-aligned batch --------------------------------
    params_f32 = prepare_memory_params(w_write, b_write, w_read, b_read,
                                       compute_dtype=jnp.float32)
    x1 = jax.random.normal(k_x1, (8, input_size), dtype=jnp.float32)
    out1 = jax.block_until_ready(memory_module_forward(x1, params_f32))
    assert out1.shape == (8, memory_size)
    assert jnp.allclose(out1, reference(x1), atol=1e-5, rtol=1e-5)

    # --- bf16 matmul path, ragged batch (masked last block, 2 grid steps) ----
    params_bf16 = prepare_memory_params(w_write, b_write, w_read, b_read,
                                        compute_dtype=jnp.bfloat16)
    x2 = jax.random.normal(k_x2, (20, input_size), dtype=jnp.float32)
    out2 = jax.block_until_ready(
        memory_module_forward(x2, params_bf16, out_dtype=jnp.float32))
    assert out2.shape == (20, memory_size)
    assert jnp.allclose(out2, reference(x2), atol=5e-2, rtol=5e-2)

    print("KERNEL_OK")
</pallas_src>

<mosaic_0001>
module attributes {stable_mosaic.version = 11 : i64} {
  func.func @memory_kernel(%arg0: i32, %arg1: memref<8x32xf32, #tpu.memory_space<vmem>>, %arg2: memref<32x256xf32, #tpu.memory_space<vmem>>, %arg3: memref<1x256xf32, #tpu.memory_space<vmem>>, %arg4: memref<8x128xf32, #tpu.memory_space<vmem>>) attributes {dimension_semantics = [#tpu.dimension_semantics<parallel>], iteration_bounds = array<i64: 1>, scalar_prefetch = 0 : i64, scratch_operands = 0 : i64, tpu.core_type = #tpu.core_type<tc>, window_params = [{transform_indices = @transform_0, window_bounds = array<i64: 8, 32>}, {pipeline_mode = #tpu.pipeline_mode<synchronous>, transform_indices = @transform_1, window_bounds = array<i64: 32, 256>}, {pipeline_mode = #tpu.pipeline_mode<synchronous>, transform_indices = @transform_2, window_bounds = array<i64: 1, 256>}, {transform_indices = @transform_3, window_bounds = array<i64: 8, 128>}]} {
    %c0 = arith.constant 0 : index
    %c0_0 = arith.constant 0 : index
    %0 = vector.load %arg1[%c0, %c0_0] : memref<8x32xf32, #tpu.memory_space<vmem>>, vector<8x32xf32>
    %c0_1 = arith.constant 0 : index
    %c0_2 = arith.constant 0 : index
    %1 = vector.load %arg3[%c0_1, %c0_2] : memref<1x256xf32, #tpu.memory_space<vmem>>, vector<1x256xf32>
    %c0_3 = arith.constant 0 : index
    %c0_4 = arith.constant 0 : index
    %2 = vector.load %arg2[%c0_3, %c0_4] : memref<32x256xf32, #tpu.memory_space<vmem>>, vector<32x256xf32>
    %cst = arith.constant dense<0.000000e+00> : vector<8x256xf32>
    %3 = tpu.matmul %0, %2, %cst {dimension_numbers = #tpu.dot_dimension_numbers<[1], [0], [0], [1], [0, 0, 1, 1], [], []>} : vector<8x32xf32>, vector<32x256xf32>, vector<8x256xf32> -> vector<8x256xf32>
    %4 = vector.broadcast %1 : vector<1x256xf32> to vector<8x256xf32>
    %5 = arith.addf %3, %4 : vector<8x256xf32>
    %6 = vector.extract_strided_slice %5 {offsets = [0, 0], sizes = [8, 128], strides = [1, 1]} : vector<8x256xf32> to vector<8x128xf32>
    %7 = math.tanh %6 : vector<8x128xf32>
    %8 = vector.extract_strided_slice %5 {offsets = [0, 128], sizes = [8, 128], strides = [1, 1]} : vector<8x256xf32> to vector<8x128xf32>
    %cst_5 = arith.constant 5.000000e-01 : f32
    %9 = vector.broadcast %cst_5 : f32 to vector<8x128xf32>
    %10 = arith.mulf %9, %8 : vector<8x128xf32>
    %11 = math.tanh %10 : vector<8x128xf32>
    %cst_6 = arith.constant 1.000000e+00 : f32
    %12 = vector.broadcast %cst_6 : f32 to vector<8x128xf32>
    %13 = arith.addf %12, %11 : vector<8x128xf32>
    %cst_7 = arith.constant 5.000000e-01 : f32
    %14 = vector.broadcast %cst_7 : f32 to vector<8x128xf32>
    %15 = arith.mulf %14, %13 : vector<8x128xf32>
    %16 = arith.mulf %7, %15 : vector<8x128xf32>
    %c0_8 = arith.constant 0 : index
    %c0_9 = arith.constant 0 : index
    %17 = vector.load %arg4[%c0_8, %c0_9] : memref<8x128xf32, #tpu.memory_space<vmem>>, vector<8x128xf32>
    tpu.vector_store %arg4[%c0_8, %c0_9], %16 {strides = array<i32>} : memref<8x128xf32, #tpu.memory_space<vmem>>, vector<8x128xf32>,
    return
  }
  func.func @transform_0(%arg0: i32) -> (i32, i32) {
    %c0_i32 = arith.constant 0 : i32
    %c0_i32_0 = arith.constant 0 : i32
    return %arg0, %c0_i32 : i32, i32
  }
  func.func @transform_1(%arg0: i32) -> (i32, i32) {
    %c0_i32 = arith.constant 0 : i32
    %c0_i32_0 = arith.constant 0 : i32
    %c0_i32_1 = arith.constant 0 : i32
    return %c0_i32, %c0_i32_0 : i32, i32
  }
  func.func @transform_2(%arg0: i32) -> (i32, i32) {
    %c0_i32 = arith.constant 0 : i32
    %c0_i32_0 = arith.constant 0 : i32
    %c0_i32_1 = arith.constant 0 : i32
    return %c0_i32, %c0_i32_0 : i32, i32
  }
  func.func @transform_3(%arg0: i32) -> (i32, i32) {
    %c0_i32 = arith.constant 0 : i32
    %c0_i32_0 = arith.constant 0 : i32
    return %arg0, %c0_i32 : i32, i32
  }
}

module attributes {stable_mosaic.version = 11 : i64} {
  func.func @memory_kernel(%arg0: i32, %arg1: memref<8x32xf32, #tpu.memory_space<vmem>>, %arg2: memref<32x256xf32, #tpu.memory_space<vmem>>, %arg3: memref<1x256xf32, #tpu.memory_space<vmem>>, %arg4: memref<8x128xf32, #tpu.memory_space<vmem>>) attributes {dimension_semantics = [#tpu.dimension_semantics<parallel>], iteration_bounds = array<i64: 1>, scalar_prefetch = 0 : i64, scratch_operands = 0 : i64, tpu.core_type = #tpu.core_type<tc>, window_params = [{transform_indices = @transform_0, window_bounds = array<i64: 8, 32>}, {pipeline_mode = #tpu.pipeline_mode<synchronous>, transform_indices = @transform_1, window_bounds = array<i64: 32, 256>}, {pipeline_mode = #tpu.pipeline_mode<synchronous>, transform_indices = @transform_2, window_bounds = array<i64: 1, 256>}, {transform_indices = @transform_3, window_bounds = array<i64: 8, 128>}]} {
    %c0 = arith.constant 0 : index
    %c0_0 = arith.constant 0 : index
    %0 = vector.load %arg1[%c0, %c0_0] : memref<8x32xf32, #tpu.memory_space<vmem>>, vector<8x32xf32>
    %c0_1 = arith.constant 0 : index
    %c0_2 = arith.constant 0 : index
    %1 = vector.load %arg3[%c0_1, %c0_2] : memref<1x256xf32, #tpu.memory_space<vmem>>, vector<1x256xf32>
    %c0_3 = arith.constant 0 : index
    %c0_4 = arith.constant 0 : index
    %2 = vector.load %arg2[%c0_3, %c0_4] : memref<32x256xf32, #tpu.memory_space<vmem>>, vector<32x256xf32>
    %cst = arith.constant dense<0.000000e+00> : vector<8x256xf32>
    %3 = tpu.matmul %0, %2, %cst {dimension_numbers = #tpu.dot_dimension_numbers<[1], [0], [0], [1], [0, 0, 1, 1], [], []>} : vector<8x32xf32>, vector<32x256xf32>, vector<8x256xf32> -> vector<8x256xf32>
    %4 = vector.broadcast %1 : vector<1x256xf32> to vector<8x256xf32>
    %5 = arith.addf %3, %4 : vector<8x256xf32>
    %6 = vector.extract_strided_slice %5 {offsets = [0, 0], sizes = [8, 128], strides = [1, 1]} : vector<8x256xf32> to vector<8x128xf32>
    %7 = math.tanh %6 : vector<8x128xf32>
    %8 = vector.extract_strided_slice %5 {offsets = [0, 128], sizes = [8, 128], strides = [1, 1]} : vector<8x256xf32> to vector<8x128xf32>
    %cst_5 = arith.constant 5.000000e-01 : f32
    %9 = vector.broadcast %cst_5 : f32 to vector<8x128xf32>
    %10 = arith.mulf %9, %8 : vector<8x128xf32>
    %11 = math.tanh %10 : vector<8x128xf32>
    %cst_6 = arith.constant 1.000000e+00 : f32
    %12 = vector.broadcast %cst_6 : f32 to vector<8x128xf32>
    %13 = arith.addf %12, %11 : vector<8x128xf32>
    %cst_7 = arith.constant 5.000000e-01 : f32
    %14 = vector.broadcast %cst_7 : f32 to vector<8x128xf32>
    %15 = arith.mulf %14, %13 : vector<8x128xf32>
    %16 = arith.mulf %7, %15 : vector<8x128xf32>
    %c0_8 = arith.constant 0 : index
    %c0_9 = arith.constant 0 : index
    %17 = vector.load %arg4[%c0_8, %c0_9] : memref<8x128xf32, #tpu.memory_space<vmem>>, vector<8x128xf32>
    tpu.vector_store %arg4[%c0_8, %c0_9], %16 {strides = array<i32>} : memref<8x128xf32, #tpu.memory_space<vmem>>, vector<8x128xf32>,
    return
  }
  func.func @transform_0(%arg0: i32) -> (i32, i32) {
    %c0_i32 = arith.constant 0 : i32
    %c0_i32_0 = arith.constant 0 : i32
    return %arg0, %c0_i32 : i32, i32
  }
  func.func @transform_1(%arg0: i32) -> (i32, i32) {
    %c0_i32 = arith.constant 0 : i32
    %c0_i32_0 = arith.constant 0 : i32
    %c0_i32_1 = arith.constant 0 : i32
    return %c0_i32, %c0_i32_0 : i32, i32
  }
  func.func @transform_2(%arg0: i32) -> (i32, i32) {
    %c0_i32 = arith.constant 0 : i32
    %c0_i32_0 = arith.constant 0 : i32
    %c0_i32_1 = arith.constant 0 : i32
    return %c0_i32, %c0_i32_0 : i32, i32
  }
  func.func @transform_3(%arg0: i32) -> (i32, i32) {
    %c0_i32 = arith.constant 0 : i32
    %c0_i32_0 = arith.constant 0 : i32
    return %arg0, %c0_i32 : i32, i32
  }
}

</mosaic_0001>

<bundles_post_ra>
// kernel: tpu_custom_call.1
= control target key start
LH: loop header
LB: loop body
LE: loop exit
PB: predicated region body
PF: predicated region fallthrough
CT: control target
= control target key end

     0   :  { %8 = vsyncpa [#allocation3], 0  ;;  %s275_s0 = inlined_call_operand.hbm [shape: f32[8,32], index: 0, kind: input, shape index: {}]   ;;  %s276_s1 = inlined_call_operand.hbm [shape: f32[32,256], index: 1, kind: input, shape index: {}]   ;;  %s277_s2 = inlined_call_operand.vmem [shape: f32[1,256], index: 2, kind: input, shape index: {}]   ;;  %s278_s3 = inlined_call_operand.hbm [shape: f32[8,128], index: 3, kind: output, shape index: {}]  }
   0x1   :  { %9 = vsyncpa [#allocation6], 0 }
   0x2   :  { %10 = vsyncpa [#allocation4], 0  ;;  %s237_s12 = smov [#allocation2]   ;;  %s238_s14 = smov [#allocation5]  }
   0x3   :  { %s17_s13 = sshll.u32 %s237_s12, 4  ;;  %s26_s15 = sshll.u32 %s238_s14, 4  ;;  %s18_s13 = int_to_ptr.vmem [resolvable:$true] %s17_s13  ;;  %s27_s15 = int_to_ptr.vmem [resolvable:$true] %s26_s15 }
   0x4   :  { %s179_s16 = scalar_lea.vmem %s18_s13, 128  ;;  %p184_p1 = scmp.lt.s32.totalorder %s18_s13, %s18_s13 }
   0x5   :  { %p180_p0 = scmp.ne.s32.totalorder %s18_s13, %s179_s16  ;;  %p185_p2 = scmp.lt.s32.totalorder %s179_s16, %s179_s16 }
   0x7   :  { %p186_p3 = por %p185_p2, %p184_p1 }
   0x9   :  { %p187_p4 = pnand %p186_p3, %p180_p0 }
   0xb   :  { %190 = shalt.err (!%p187_p4)
}
   0xc   :  { %20 = dma.hbm_to_vmem [thread:$0]  %s275_s0, 128, %s18_s13, [#allocation3]  }
   0xd   :  { %s199_s19 = scalar_lea.vmem %s27_s15, 1024  ;;  %p204_p6 = scmp.lt.s32.totalorder %s27_s15, %s27_s15 }
   0xe   :  { %p200_p5 = scmp.ne.s32.totalorder %s27_s15, %s199_s19  ;;  %p205_p7 = scmp.lt.s32.totalorder %s199_s19, %s199_s19 }
  0x10   :  { %p206_p8 = por %p205_p7, %p204_p6 }
  0x12   :  { %p207_p9 = pnand %p206_p8, %p200_p5 }
  0x14   :  { %210 = shalt.err (!%p207_p9)
}
  0x15   :  { %s239_s20 = smov 256   ;;  %s240_s21 = smov 16  }
  0x16   :  { %32 = dma.hbm_to_vmem [thread:$0]  %s276_s1, 1024, %s27_s15, [#allocation6], %s239_s20, %s239_s20, %s240_s21  }
  0x17   :  { %231 = dma.done.wait [#allocation3], 128  }
  0x18   :  { %232 = vsyncadd [#allocation3], 4294967168 }
  0x19   :  { %233 = dma.done.wait [#allocation6], 1024  }
  0x1a   :  { %234 = vsyncadd [#allocation6], 4294966272  ;;  %v241_v0 = vmov 0.0   ;;  %v50_v1 = vld [vmem:[#allocation5 + $0x38] sm:$0xff]  ;;  %v49_v2 = vld [vmem:[#allocation5 + $0x30] sm:$0xff]  ;;  %vm62_vm0 = vcmask 261120   ;;  %v52_v10 = vlaneseq }
  0x1b   :  { %130 = vmatprep.mubr.f32.mxu0 %v241_v0  ;;  %v48_v3 = vld [vmem:[#allocation5 + $0x28] sm:$0xff]  ;;  %90 = vmatprep.subr.mxu0 %v50_v1  ;;  %v47_v4 = vld [vmem:[#allocation5 + $0x20] sm:$0xff]  ;;  %v46_v5 = vld [vmem:[#allocation5 + $0x18] sm:$0xff]  ;;  %s242_s24 = smov [#allocation7]  }
  0x1c   :  { %91 = vmatpush1.msra.mxu0 %v49_v2  ;;  %v45_v6 = vld [vmem:[#allocation5 + $0x10] sm:$0xff]  ;;  %v44_v7 = vld [vmem:[#allocation5 + $0x8] sm:$0xff]  ;;  %v43_v8 = vld [vmem:[#allocation5] sm:$0xff]  ;;  %v53_v11 = vshrl.u32 %v52_v10, 7  ;;  %s150_s25 = sshll.u32 %s242_s24, 4  ;;  %s151_s25 = int_to_ptr.vmem [resolvable:$true] %s150_s25 }
  0x1d   :  { %92 = vmatprep.subr.mxu0 %v48_v3  ;;  %v41_v9 = vld [vmem:[#allocation2] sm:$0xff]  ;;  %p216_p11 = scmp.lt.s32.totalorder %s151_s25, %s151_s25 }
  0x1e   :  { %93 = vmatpush1.msra.mxu0 %v47_v4  ;;  %v58_v12 = vsub.s32 1, %v53_v11  ;;  %v42_v13 = vld [vmem:[%s277_s2] sm:$0x3]  ;;  %v54_v14 = vsub.s32 0, %v53_v11  ;;  %s211_s2 = scalar_lea.vmem %s151_s25, 128 }
  0x1f   :  { %94 = vmatprep.subr.mxu0 %v46_v5  ;;  %p212_p10 = scmp.ne.s32.totalorder %s151_s25, %s211_s2  ;;  %p217_p12 = scmp.lt.s32.totalorder %s211_s2, %s211_s2 }
  0x20   :  { %95 = vmatpush1.msra.mxu0 %v45_v6  ;;  %v59_v15 = vrot.slane %v42_v13, %v58_v12  ;;  %v55_v18 = vrot.slane %v42_v13, %v54_v14 }
  0x21   :  { %96 = vmatprep.subr.mxu0 %v44_v7  ;;  %p218_p13 = por %p217_p12, %p216_p11 }
  0x22   :  { %97 = vmatpush1.msra.mxu0 %v43_v8 }
  0x23   :  { %160 = vmatmul.mubr.msk.f32.vlgmr.msra.gmra.mxu0 %vm62_vm0, %v41_v9  ;;  %p219_p0 = pnand %p218_p13, %p212_p10 }
  0xe3   :  { %v132_v16 = vpop.f32.mrf.mxu0 }
  0xe4   :  { %v133_v21 = vadd.f32 %v132_v16, %v55_v18 }
  0xe5   :  { %v134_v17 = vpop.f32.mrf.mxu0 }
  0xe6   :  { %v135_v19 = vadd.f32 %v134_v17, %v59_v15 }
  0xe8   :  { %v138_v20 = vmul.f32 0.5, %v135_v19 }
  0xea   :  { %167 = vtanh.f32 %v138_v20 }
  0xeb   :  { %169 = vtanh.f32 %v133_v21 }
  0xf7   :  { %v168_v22 = vpop.eup %167 }
  0xf8   :  { %v140_v23 = vadd.f32 1.0, %v168_v22  ;;  %v170_v25 = vpop.eup %169 }
  0xfa   :  { %v141_v24 = vmul.f32 0.5, %v140_v23 }
  0xfc   :  { %v142_v26 = vmul.f32 %v170_v25, %v141_v24 }
  0xfe   :  { %143 = vst [vmem:[#allocation7] sm:$0xff] %v142_v26 }
  0xff   :  { %222 = shalt.err (!%p219_p0)
}
 0x100   :  { %153 = dma.vmem_to_hbm [thread:$0]  %s151_s25, 128, %s278_s3, [#allocation4]  }
 0x101   :  { %235 = dma.done.wait [#allocation4], 128  }
 0x102   :  { %236 = vsyncadd [#allocation4], 4294967168 }
 0x103   :  { %157 = vsyncpa [#allocation3], 1 }
 0x104   :  { %158 = vsyncpa [#allocation6], 1 }
 0x105   :  { %159 = vsyncpa [#allocation4], 1 }

// kernel: tpu_custom_call.1
= control target key start
LH: loop header
LB: loop body
LE: loop exit
PB: predicated region body
PF: predicated region fallthrough
CT: control target
= control target key end

     0   :  { %8 = vsyncpa [#allocation3], 0  ;;  %s275_s0 = inlined_call_operand.hbm [shape: f32[8,32], index: 0, kind: input, shape index: {}]   ;;  %s276_s1 = inlined_call_operand.hbm [shape: f32[32,256], index: 1, kind: input, shape index: {}]   ;;  %s277_s2 = inlined_call_operand.vmem [shape: f32[1,256], index: 2, kind: input, shape index: {}]   ;;  %s278_s3 = inlined_call_operand.hbm [shape: f32[8,128], index: 3, kind: output, shape index: {}]  }
   0x1   :  { %9 = vsyncpa [#allocation6], 0 }
   0x2   :  { %10 = vsyncpa [#allocation4], 0  ;;  %s237_s12 = smov [#allocation2]   ;;  %s238_s14 = smov [#allocation5]  }
   0x3   :  { %s17_s13 = sshll.u32 %s237_s12, 4  ;;  %s26_s15 = sshll.u32 %s238_s14, 4  ;;  %s18_s13 = int_to_ptr.vmem [resolvable:$true] %s17_s13  ;;  %s27_s15 = int_to_ptr.vmem [resolvable:$true] %s26_s15 }
   0x4   :  { %s179_s16 = scalar_lea.vmem %s18_s13, 128  ;;  %p184_p1 = scmp.lt.s32.totalorder %s18_s13, %s18_s13 }
   0x5   :  { %p180_p0 = scmp.ne.s32.totalorder %s18_s13, %s179_s16  ;;  %p185_p2 = scmp.lt.s32.totalorder %s179_s16, %s179_s16 }
   0x7   :  { %p186_p3 = por %p185_p2, %p184_p1 }
   0x9   :  { %p187_p4 = pnand %p186_p3, %p180_p0 }
   0xb   :  { %190 = shalt.err (!%p187_p4)
}
   0xc   :  { %20 = dma.hbm_to_vmem [thread:$0]  %s275_s0, 128, %s18_s13, [#allocation3]  }
   0xd   :  { %s199_s19 = scalar_lea.vmem %s27_s15, 1024  ;;  %p204_p6 = scmp.lt.s32.totalorder %s27_s15, %s27_s15 }
   0xe   :  { %p200_p5 = scmp.ne.s32.totalorder %s27_s15, %s199_s19  ;;  %p205_p7 = scmp.lt.s32.totalorder %s199_s19, %s199_s19 }
  0x10   :  { %p206_p8 = por %p205_p7, %p204_p6 }
  0x12   :  { %p207_p9 = pnand %p206_p8, %p200_p5 }
  0x14   :  { %210 = shalt.err (!%p207_p9)
}
  0x15   :  { %s239_s20 = smov 256   ;;  %s240_s21 = smov 16  }
  0x16   :  { %32 = dma.hbm_to_vmem [thread:$0]  %s276_s1, 1024, %s27_s15, [#allocation6], %s239_s20, %s239_s20, %s240_s21  }
  0x17   :  { %231 = dma.done.wait [#allocation3], 128  }
  0x18   :  { %232 = vsyncadd [#allocation3], 4294967168 }
  0x19   :  { %233 = dma.done.wait [#allocation6], 1024  }
  0x1a   :  { %234 = vsyncadd [#allocation6], 4294966272  ;;  %v241_v0 = vmov 0.0   ;;  %v50_v1 = vld [vmem:[#allocation5 + $0x38] sm:$0xff]  ;;  %v49_v2 = vld [vmem:[#allocation5 + $0x30] sm:$0xff]  ;;  %vm62_vm0 = vcmask 261120   ;;  %v52_v10 = vlaneseq }
  0x1b   :  { %130 = vmatprep.mubr.f32.mxu0 %v241_v0  ;;  %v48_v3 = vld [vmem:[#allocation5 + $0x28] sm:$0xff]  ;;  %90 = vmatprep.subr.mxu0 %v50_v1  ;;  %v47_v4 = vld [vmem:[#allocation5 + $0x20] sm:$0xff]  ;;  %v46_v5 = vld [vmem:[#allocation5 + $0x18] sm:$0xff]  ;;  %s242_s24 = smov [#allocation7]  }
  0x1c   :  { %91 = vmatpush1.msra.mxu0 %v49_v2  ;;  %v45_v6 = vld [vmem:[#allocation5 + $0x10] sm:$0xff]  ;;  %v44_v7 = vld [vmem:[#allocation5 + $0x8] sm:$0xff]  ;;  %v43_v8 = vld [vmem:[#allocation5] sm:$0xff]  ;;  %v53_v11 = vshrl.u32 %v52_v10, 7  ;;  %s150_s25 = sshll.u32 %s242_s24, 4  ;;  %s151_s25 = int_to_ptr.vmem [resolvable:$true] %s150_s25 }
  0x1d   :  { %92 = vmatprep.subr.mxu0 %v48_v3  ;;  %v41_v9 = vld [vmem:[#allocation2] sm:$0xff]  ;;  %p216_p11 = scmp.lt.s32.totalorder %s151_s25, %s151_s25 }
  0x1e   :  { %93 = vmatpush1.msra.mxu0 %v47_v4  ;;  %v58_v12 = vsub.s32 1, %v53_v11  ;;  %v42_v13 = vld [vmem:[%s277_s2] sm:$0x3]  ;;  %v54_v14 = vsub.s32 0, %v53_v11  ;;  %s211_s2 = scalar_lea.vmem %s151_s25, 128 }
  0x1f   :  { %94 = vmatprep.subr.mxu0 %v46_v5  ;;  %p212_p10 = scmp.ne.s32.totalorder %s151_s25, %s211_s2  ;;  %p217_p12 = scmp.lt.s32.totalorder %s211_s2, %s211_s2 }
  0x20   :  { %95 = vmatpush1.msra.mxu0 %v45_v6  ;;  %v59_v15 = vrot.slane %v42_v13, %v58_v12  ;;  %v55_v18 = vrot.slane %v42_v13, %v54_v14 }
  0x21   :  { %96 = vmatprep.subr.mxu0 %v44_v7  ;;  %p218_p13 = por %p217_p12, %p216_p11 }
  0x22   :  { %97 = vmatpush1.msra.mxu0 %v43_v8 }
  0x23   :  { %160 = vmatmul.mubr.msk.f32.vlgmr.msra.gmra.mxu0 %vm62_vm0, %v41_v9  ;;  %p219_p0 = pnand %p218_p13, %p212_p10 }
  0xe3   :  { %v132_v16 = vpop.f32.mrf.mxu0 }
  0xe4   :  { %v133_v21 = vadd.f32 %v132_v16, %v55_v18 }
  0xe5   :  { %v134_v17 = vpop.f32.mrf.mxu0 }
  0xe6   :  { %v135_v19 = vadd.f32 %v134_v17, %v59_v15 }
  0xe8   :  { %v138_v20 = vmul.f32 0.5, %v135_v19 }
  0xea   :  { %167 = vtanh.f32 %v138_v20 }
  0xeb   :  { %169 = vtanh.f32 %v133_v21 }
  0xf7   :  { %v168_v22 = vpop.eup %167 }
  0xf8   :  { %v140_v23 = vadd.f32 1.0, %v168_v22  ;;  %v170_v25 = vpop.eup %169 }
  0xfa   :  { %v141_v24 = vmul.f32 0.5, %v140_v23 }
  0xfc   :  { %v142_v26 = vmul.f32 %v170_v25, %v141_v24 }
  0xfe   :  { %143 = vst [vmem:[#allocation7] sm:$0xff] %v142_v26 }
  0xff   :  { %222 = shalt.err (!%p219_p0)
}
 0x100   :  { %153 = dma.vmem_to_hbm [thread:$0]  %s151_s25, 128, %s278_s3, [#allocation4]  }
 0x101   :  { %235 = dma.done.wait [#allocation4], 128  }
 0x102   :  { %236 = vsyncadd [#allocation4], 4294967168 }
 0x103   :  { %157 = vsyncpa [#allocation3], 1 }
 0x104   :  { %158 = vsyncpa [#allocation6], 1 }
 0x105   :  { %159 = vsyncpa [#allocation4], 1 }

</bundles_post_ra>
